<compile_context>
chip_gen: v7x
topology: tpu7x:2x2x1
jax: 0.10.0
libtpu: 0.0.40
codegen_flags: <defaults>
</compile_context>

<pallas_src>
import math

import jax
import jax.numpy as jnp
from jax.experimental import pallas as pl
from jax.experimental.pallas import tpu as pltpu

_MIN_TB = 16  # bf16 native sublane tile is (16, 128)


def _round_up(x: int, m: int) -> int:
    return ((x + m - 1) // m) * m


def dqn_kernel(x_ref, w1_ref, b1_ref, w2_ref, b2_ref, w3_ref, b3_ref, o_ref):
    # ---- layer 1 + ReLU -----------------------------------------------------
    # K = n_obs is tiny (4 for CartPole): do it on the VPU as broadcast MACs in
    # f32 (keeps the MXU/vector-extended slot free, no K padding needed).
    x = x_ref[...]                       # (tb, n_obs) f32
    w1 = w1_ref[...]                     # (n_obs, hidden) f32
    n_obs = x.shape[1]
    if n_obs <= 16:
        h1 = x[:, 0:1] * w1[0:1, :]
        for k in range(1, n_obs):        # static, unrolled at trace time
            h1 = h1 + x[:, k:k + 1] * w1[k:k + 1, :]
    else:
        h1 = jnp.dot(x, w1, preferred_element_type=jnp.float32)
    h1 = jnp.maximum(h1 + b1_ref[...], 0.0)

    # ---- layer 2 + ReLU (bf16 MXU matmul, f32 accumulation) -----------------
    h2 = jnp.dot(h1.astype(jnp.bfloat16), w2_ref[...],
                 preferred_element_type=jnp.float32)
    h2 = jnp.maximum(h2 + b2_ref[...], 0.0)

    # ---- layer 3 (no activation), lane-dense padded bf16 store --------------
    out = jnp.dot(h2.astype(jnp.bfloat16), w3_ref[...],
                  preferred_element_type=jnp.float32)
    o_ref[...] = (out + b3_ref[...]).astype(o_ref.dtype)


def prepare_params(w1, b1, w2, b2, w3, b3):
    """One-time parameter prep (padding + bf16 casting), hoisted out of the
    per-call forward path.  w*: [in, out] f32, b*: [1, out] f32."""
    bf16 = jnp.bfloat16
    hidden = w2.shape[0]
    n_actions = w3.shape[1]
    n_act_p = _round_up(max(n_actions, 1), 128)   # lane-dense output, unmasked vst
    w3p = jnp.zeros((hidden, n_act_p), bf16).at[:, :n_actions].set(w3.astype(bf16))
    b3p = jnp.zeros((1, n_act_p), jnp.float32).at[:, :n_actions].set(
        b3.astype(jnp.float32))
    return {
        "w1": w1.astype(jnp.float32), "b1": b1.astype(jnp.float32),  # VPU layer (f32)
        "w2": w2.astype(bf16),        "b2": b2.astype(jnp.float32),  # MXU layer
        "w3": w3p,                    "b3": b3p,                     # MXU layer (padded)
        "n_actions": n_actions,
    }


def _choose_batch_tile(B: int, block_b: int) -> int:
    if B < 2 * _MIN_TB:
        # Tiny (online-inference) batch: one grid step covering the whole batch.
        # Using the exact batch extent as the block is always layout-legal.
        return B
    # Non-trivial batch: >=2 grid steps with an even count so the "parallel"
    # batch axis lands on both v7x TensorCores with balanced work.  Per-step
    # rows capped near block_b and rounded to the bf16 sublane tile (16).
    n_steps = max(2, pl.cdiv(B, block_b))
    if n_steps % 2:
        n_steps += 1
    return _round_up(pl.cdiv(B, n_steps), _MIN_TB)


def dqn_forward(x, params, *, block_b: int = 1024):
    """x: [B, n_obs] f32.  params: output of prepare_params.  Returns [B, n_actions] f32."""
    B, n_obs = x.shape
    w1, b1 = params["w1"], params["b1"]
    w2, b2 = params["w2"], params["b2"]
    w3, b3 = params["w3"], params["b3"]
    n_actions = params["n_actions"]
    hidden = w2.shape[0]
    n_act_p = w3.shape[1]

    tb = _choose_batch_tile(B, block_b)
    grid = (pl.cdiv(B, tb),)

    resident = lambda shape: pl.BlockSpec(shape, lambda i: (0, 0))  # VMEM-resident

    out = pl.pallas_call(
        dqn_kernel,
        out_shape=jax.ShapeDtypeStruct((B, n_act_p), jnp.bfloat16),
        grid=grid,
        in_specs=[
            pl.BlockSpec((tb, n_obs), lambda i: (i, 0)),          # x: tiled over batch
            resident((n_obs, hidden)), resident((1, hidden)),     # layer 1 (f32, VPU)
            resident((hidden, hidden)), resident((1, hidden)),    # layer 2 (bf16, MXU)
            resident((hidden, n_act_p)), resident((1, n_act_p)),  # layer 3 (bf16, MXU)
        ],
        out_specs=pl.BlockSpec((tb, n_act_p), lambda i: (i, 0)),
        compiler_params=pltpu.CompilerParams(
            dimension_semantics=("parallel",),   # shard batch across v7x's 2 TCs
            vmem_limit_bytes=32 * 1024 * 1024,
        ),
    )(x, w1, b1, w2, b2, w3, b3)

    # Partial-last-block garbage rows and padded action lanes are dropped here.
    return out[:B, :n_actions].astype(jnp.float32)


def dqn_reference(x, w1, b1, w2, b2, w3, b3):
    """Pure-JAX reference mirroring the kernel numerics: f32 layer 1,
    bf16-input / f32-accumulate MXU layers, bf16 output store."""
    bf16 = jnp.bfloat16
    h = jnp.maximum(jnp.dot(x, w1, preferred_element_type=jnp.float32) + b1, 0.0)
    h = jnp.dot(h.astype(bf16), w2.astype(bf16), preferred_element_type=jnp.float32)
    h = jnp.maximum(h + b2, 0.0)
    out = jnp.dot(h.astype(bf16), w3.astype(bf16),
                  preferred_element_type=jnp.float32) + b3
    return out.astype(bf16).astype(jnp.float32)


def init_linear(key, fan_in, fan_out):
    # Mimics PyTorch nn.Linear init: U(-1/sqrt(fan_in), 1/sqrt(fan_in)).
    kw, kb = jax.random.split(key)
    bound = 1.0 / math.sqrt(fan_in)
    w = jax.random.uniform(kw, (fan_in, fan_out), jnp.float32, -bound, bound)
    b = jax.random.uniform(kb, (1, fan_out), jnp.float32, -bound, bound)
    return w, b


if __name__ == "__main__":
    n_observations = 4   # CartPole-style observation dim
    n_actions = 2
    hidden_dim = 128

    key = jax.random.PRNGKey(0)
    kx, k1, k2, k3, kx2 = jax.random.split(key, 5)

    w1, b1 = init_linear(k1, n_observations, hidden_dim)
    w2, b2 = init_linear(k2, hidden_dim, hidden_dim)
    w3, b3 = init_linear(k3, hidden_dim, n_actions)

    params = prepare_params(w1, b1, w2, b2, w3, b3)   # one-time prep (hoisted)

    # Small online-inference-style batch (single grid step).
    x_small = jax.random.normal(kx, (8, n_observations), jnp.float32)
    out_small = jax.block_until_ready(dqn_forward(x_small, params))
    ref_small = dqn_reference(x_small, w1, b1, w2, b2, w3, b3)
    assert out_small.shape == (8, n_actions)
    assert jnp.allclose(out_small, ref_small, atol=5e-3, rtol=5e-3)

    # Training-size batch: exercises the even 2-step grid and a partial last block.
    x_big = jax.random.normal(kx2, (600, n_observations), jnp.float32)
    out_big = jax.block_until_ready(dqn_forward(x_big, params))
    ref_big = dqn_reference(x_big, w1, b1, w2, b2, w3, b3)
    assert out_big.shape == (600, n_actions)
    assert jnp.allclose(out_big, ref_big, atol=5e-3, rtol=5e-3)

    print("KERNEL_OK")
</pallas_src>

<mosaic_0001>
module attributes {stable_mosaic.version = 11 : i64} {
  func.func @dqn_kernel(%arg0: i32, %arg1: memref<8x4xf32, #tpu.memory_space<vmem>>, %arg2: memref<4x128xf32, #tpu.memory_space<vmem>>, %arg3: memref<1x128xf32, #tpu.memory_space<vmem>>, %arg4: memref<128x128xbf16, #tpu.memory_space<vmem>>, %arg5: memref<1x128xf32, #tpu.memory_space<vmem>>, %arg6: memref<128x128xbf16, #tpu.memory_space<vmem>>, %arg7: memref<1x128xf32, #tpu.memory_space<vmem>>, %arg8: memref<8x128xbf16, #tpu.memory_space<vmem>>) attributes {dimension_semantics = [#tpu.dimension_semantics<parallel>], iteration_bounds = array<i64: 1>, scalar_prefetch = 0 : i64, scratch_operands = 0 : i64, tpu.core_type = #tpu.core_type<tc>, window_params = [{transform_indices = @transform_0, window_bounds = array<i64: 8, 4>}, {pipeline_mode = #tpu.pipeline_mode<synchronous>, transform_indices = @transform_1, window_bounds = array<i64: 4, 128>}, {pipeline_mode = #tpu.pipeline_mode<synchronous>, transform_indices = @transform_2, window_bounds = array<i64: 1, 128>}, {pipeline_mode = #tpu.pipeline_mode<synchronous>, transform_indices = @transform_3, window_bounds = array<i64: 128, 128>}, {pipeline_mode = #tpu.pipeline_mode<synchronous>, transform_indices = @transform_4, window_bounds = array<i64: 1, 128>}, {pipeline_mode = #tpu.pipeline_mode<synchronous>, transform_indices = @transform_5, window_bounds = array<i64: 128, 128>}, {pipeline_mode = #tpu.pipeline_mode<synchronous>, transform_indices = @transform_6, window_bounds = array<i64: 1, 128>}, {transform_indices = @transform_7, window_bounds = array<i64: 8, 128>}]} {
    %c0 = arith.constant 0 : index
    %c0_0 = arith.constant 0 : index
    %0 = vector.load %arg1[%c0, %c0_0] : memref<8x4xf32, #tpu.memory_space<vmem>>, vector<8x4xf32>
    %c0_1 = arith.constant 0 : index
    %c0_2 = arith.constant 0 : index
    %1 = vector.load %arg2[%c0_1, %c0_2] : memref<4x128xf32, #tpu.memory_space<vmem>>, vector<4x128xf32>
    %2 = vector.extract_strided_slice %0 {offsets = [0, 0], sizes = [8, 1], strides = [1, 1]} : vector<8x4xf32> to vector<8x1xf32>
    %3 = vector.extract_strided_slice %1 {offsets = [0, 0], sizes = [1, 128], strides = [1, 1]} : vector<4x128xf32> to vector<1x128xf32>
    %4 = vector.broadcast %2 : vector<8x1xf32> to vector<8x128xf32>
    %5 = vector.broadcast %3 : vector<1x128xf32> to vector<8x128xf32>
    %6 = arith.mulf %4, %5 : vector<8x128xf32>
    %7 = vector.extract_strided_slice %0 {offsets = [0, 1], sizes = [8, 1], strides = [1, 1]} : vector<8x4xf32> to vector<8x1xf32>
    %8 = vector.extract_strided_slice %1 {offsets = [1, 0], sizes = [1, 128], strides = [1, 1]} : vector<4x128xf32> to vector<1x128xf32>
    %9 = vector.broadcast %7 : vector<8x1xf32> to vector<8x128xf32>
    %10 = vector.broadcast %8 : vector<1x128xf32> to vector<8x128xf32>
    %11 = arith.mulf %9, %10 : vector<8x128xf32>
    %12 = arith.addf %6, %11 : vector<8x128xf32>
    %13 = vector.extract_strided_slice %0 {offsets = [0, 2], sizes = [8, 1], strides = [1, 1]} : vector<8x4xf32> to vector<8x1xf32>
    %14 = vector.extract_strided_slice %1 {offsets = [2, 0], sizes = [1, 128], strides = [1, 1]} : vector<4x128xf32> to vector<1x128xf32>
    %15 = vector.broadcast %13 : vector<8x1xf32> to vector<8x128xf32>
    %16 = vector.broadcast %14 : vector<1x128xf32> to vector<8x128xf32>
    %17 = arith.mulf %15, %16 : vector<8x128xf32>
    %18 = arith.addf %12, %17 : vector<8x128xf32>
    %19 = vector.extract_strided_slice %0 {offsets = [0, 3], sizes = [8, 1], strides = [1, 1]} : vector<8x4xf32> to vector<8x1xf32>
    %20 = vector.extract_strided_slice %1 {offsets = [3, 0], sizes = [1, 128], strides = [1, 1]} : vector<4x128xf32> to vector<1x128xf32>
    %21 = vector.broadcast %19 : vector<8x1xf32> to vector<8x128xf32>
    %22 = vector.broadcast %20 : vector<1x128xf32> to vector<8x128xf32>
    %23 = arith.mulf %21, %22 : vector<8x128xf32>
    %24 = arith.addf %18, %23 : vector<8x128xf32>
    %c0_3 = arith.constant 0 : index
    %c0_4 = arith.constant 0 : index
    %25 = vector.load %arg3[%c0_3, %c0_4] : memref<1x128xf32, #tpu.memory_space<vmem>>, vector<1x128xf32>
    %26 = vector.broadcast %25 : vector<1x128xf32> to vector<8x128xf32>
    %27 = arith.addf %24, %26 : vector<8x128xf32>
    %cst = arith.constant 0.000000e+00 : f32
    %28 = vector.broadcast %cst : f32 to vector<8x128xf32>
    %29 = arith.maximumf %27, %28 : vector<8x128xf32>
    %30 = arith.truncf %29 : vector<8x128xf32> to vector<8x128xbf16>
    %c0_5 = arith.constant 0 : index
    %c0_6 = arith.constant 0 : index
    %31 = vector.load %arg4[%c0_5, %c0_6] : memref<128x128xbf16, #tpu.memory_space<vmem>>, vector<128x128xbf16>
    %cst_7 = arith.constant dense<0.000000e+00> : vector<8x128xf32>
    %32 = tpu.matmul %30, %31, %cst_7 {dimension_numbers = #tpu.dot_dimension_numbers<[1], [0], [0], [1], [0, 0, 1, 1], [], []>} : vector<8x128xbf16>, vector<128x128xbf16>, vector<8x128xf32> -> vector<8x128xf32>
    %c0_8 = arith.constant 0 : index
    %c0_9 = arith.constant 0 : index
    %33 = vector.load %arg5[%c0_8, %c0_9] : memref<1x128xf32, #tpu.memory_space<vmem>>, vector<1x128xf32>
    %34 = vector.broadcast %33 : vector<1x128xf32> to vector<8x128xf32>
    %35 = arith.addf %32, %34 : vector<8x128xf32>
    %cst_10 = arith.constant 0.000000e+00 : f32
    %36 = vector.broadcast %cst_10 : f32 to vector<8x128xf32>
    %37 = arith.maximumf %35, %36 : vector<8x128xf32>
    %38 = arith.truncf %37 : vector<8x128xf32> to vector<8x128xbf16>
    %c0_11 = arith.constant 0 : index
    %c0_12 = arith.constant 0 : index
    %39 = vector.load %arg6[%c0_11, %c0_12] : memref<128x128xbf16, #tpu.memory_space<vmem>>, vector<128x128xbf16>
    %cst_13 = arith.constant dense<0.000000e+00> : vector<8x128xf32>
    %40 = tpu.matmul %38, %39, %cst_13 {dimension_numbers = #tpu.dot_dimension_numbers<[1], [0], [0], [1], [0, 0, 1, 1], [], []>} : vector<8x128xbf16>, vector<128x128xbf16>, vector<8x128xf32> -> vector<8x128xf32>
    %c0_14 = arith.constant 0 : index
    %c0_15 = arith.constant 0 : index
    %41 = vector.load %arg7[%c0_14, %c0_15] : memref<1x128xf32, #tpu.memory_space<vmem>>, vector<1x128xf32>
    %42 = vector.broadcast %41 : vector<1x128xf32> to vector<8x128xf32>
    %43 = arith.addf %40, %42 : vector<8x128xf32>
    %44 = arith.truncf %43 : vector<8x128xf32> to vector<8x128xbf16>
    %c0_16 = arith.constant 0 : index
    %c0_17 = arith.constant 0 : index
    %45 = vector.load %arg8[%c0_16, %c0_17] : memref<8x128xbf16, #tpu.memory_space<vmem>>, vector<8x128xbf16>
    tpu.vector_store %arg8[%c0_16, %c0_17], %44 {strides = array<i32>} : memref<8x128xbf16, #tpu.memory_space<vmem>>, vector<8x128xbf16>,
    return
  }
  func.func @transform_0(%arg0: i32) -> (i32, i32) {
    %c0_i32 = arith.constant 0 : i32
    %c0_i32_0 = arith.constant 0 : i32
    return %arg0, %c0_i32 : i32, i32
  }
  func.func @transform_1(%arg0: i32) -> (i32, i32) {
    %c0_i32 = arith.constant 0 : i32
    %c0_i32_0 = arith.constant 0 : i32
    %c0_i32_1 = arith.constant 0 : i32
    return %c0_i32, %c0_i32_0 : i32, i32
  }
  func.func @transform_2(%arg0: i32) -> (i32, i32) {
    %c0_i32 = arith.constant 0 : i32
    %c0_i32_0 = arith.constant 0 : i32
    %c0_i32_1 = arith.constant 0 : i32
    return %c0_i32, %c0_i32_0 : i32, i32
  }
  func.func @transform_3(%arg0: i32) -> (i32, i32) {
    %c0_i32 = arith.constant 0 : i32
    %c0_i32_0 = arith.constant 0 : i32
    %c0_i32_1 = arith.constant 0 : i32
    return %c0_i32, %c0_i32_0 : i32, i32
  }
  func.func @transform_4(%arg0: i32) -> (i32, i32) {
    %c0_i32 = arith.constant 0 : i32
    %c0_i32_0 = arith.constant 0 : i32
    %c0_i32_1 = arith.constant 0 : i32
    return %c0_i32, %c0_i32_0 : i32, i32
  }
  func.func @transform_5(%arg0: i32) -> (i32, i32) {
    %c0_i32 = arith.constant 0 : i32
    %c0_i32_0 = arith.constant 0 : i32
    %c0_i32_1 = arith.constant 0 : i32
    return %c0_i32, %c0_i32_0 : i32, i32
  }
  func.func @transform_6(%arg0: i32) -> (i32, i32) {
    %c0_i32 = arith.constant 0 : i32
    %c0_i32_0 = arith.constant 0 : i32
    %c0_i32_1 = arith.constant 0 : i32
    return %c0_i32, %c0_i32_0 : i32, i32
  }
  func.func @transform_7(%arg0: i32) -> (i32, i32) {
    %c0_i32 = arith.constant 0 : i32
    %c0_i32_0 = arith.constant 0 : i32
    return %arg0, %c0_i32 : i32, i32
  }
}

</mosaic_0001>

<bundles_post_ra>
// kernel: tpu_custom_call.1
= control target key start
LH: loop header
LB: loop body
LE: loop exit
PB: predicated region body
PF: predicated region fallthrough
CT: control target
= control target key end

     0   :  { %12 = vsyncpa [#allocation3], 0  ;;  %s651_s0 = inlined_call_operand.vmem [shape: f32[8,4], index: 0, kind: input, shape index: {}]   ;;  %s652_s1 = inlined_call_operand.vmem [shape: f32[4,128], index: 1, kind: input, shape index: {}]   ;;  %s653_s2 = inlined_call_operand.vmem [shape: f32[1,128], index: 2, kind: input, shape index: {}]   ;;  %s654_s3 = inlined_call_operand.hbm [shape: bf16[128,128], index: 3, kind: input, shape index: {}]   ;;  %s655_s4 = inlined_call_operand.vmem [shape: f32[1,128], index: 4, kind: input, shape index: {}]   ;;  %s656_s5 = inlined_call_operand.hbm [shape: bf16[128,128], index: 5, kind: input, shape index: {}]   ;;  %s657_s6 = inlined_call_operand.vmem [shape: f32[1,128], index: 6, kind: input, shape index: {}]   ;;  %s658_s7 = inlined_call_operand.hbm [shape: bf16[8,128], index: 7, kind: output, shape index: {}]  }
   0x1   :  { %13 = vsyncpa [#allocation6], 0 }
   0x2   :  { %14 = vsyncpa [#allocation4], 0  ;;  %s531_s24 = smov [#allocation2]   ;;  %s459_s28 = scalar_lea.hbm %s654_s3, 1024 }
   0x3   :  { %s26_s25 = sshll.u32 %s531_s24, 4  ;;  %p460_p0 = scmp.ne.s32.totalorder %s654_s3, %s459_s28  ;;  %s27_s25 = int_to_ptr.vmem [resolvable:$true] %s26_s25 }
   0x4   :  { %p463_p1 = scmp.lt.u32.totalorder %s459_s28, %s654_s3 }
   0x6   :  { %p465_p2 = pnand %p463_p1, %p460_p0 }
   0x8   :  { %468 = shalt.err (!%p465_p2)
}
   0x9   :  { %s469_s10 = scalar_lea.vmem %s27_s25, 1024  ;;  %p474_p4 = scmp.lt.s32.totalorder %s27_s25, %s27_s25 }
   0xa   :  { %p470_p3 = scmp.ne.s32.totalorder %s27_s25, %s469_s10  ;;  %p475_p5 = scmp.lt.s32.totalorder %s469_s10, %s469_s10 }
   0xc   :  { %p476_p6 = por %p475_p5, %p474_p4 }
   0xe   :  { %p477_p7 = pnand %p476_p6, %p470_p3 }
  0x10   :  { %480 = shalt.err (!%p477_p7)
}
  0x11   :  { %s532_s11 = smov 64   ;;  %s533_s12 = smov 4  }
  0x12   :  { %32 = dma.hbm_to_vmem [thread:$0]  %s654_s3, 1024, %s27_s25, [#allocation3], %s532_s11, %s532_s11, %s533_s12  }
  0x13   :  { %s534_s15 = smov [#allocation5]   ;;  %s481_s19 = scalar_lea.hbm %s656_s5, 1024 }
  0x14   :  { %s40_s16 = sshll.u32 %s534_s15, 4  ;;  %p482_p8 = scmp.ne.s32.totalorder %s656_s5, %s481_s19  ;;  %s41_s16 = int_to_ptr.vmem [resolvable:$true] %s40_s16 }
  0x15   :  { %p485_p9 = scmp.lt.u32.totalorder %s481_s19, %s656_s5 }
  0x17   :  { %p487_p10 = pnand %p485_p9, %p482_p8 }
  0x19   :  { %490 = shalt.err (!%p487_p10)
}
  0x1a   :  { %s491_s24 = scalar_lea.vmem %s41_s16, 1024  ;;  %p496_p12 = scmp.lt.s32.totalorder %s41_s16, %s41_s16 }
  0x1b   :  { %p492_p11 = scmp.ne.s32.totalorder %s41_s16, %s491_s24  ;;  %p497_p13 = scmp.lt.s32.totalorder %s491_s24, %s491_s24 }
  0x1d   :  { %p498_p0 = por %p497_p13, %p496_p12 }
  0x1f   :  { %p499_p1 = pnand %p498_p0, %p492_p11 }
  0x21   :  { %502 = shalt.err (!%p499_p1)
}
  0x22   :  { %46 = dma.hbm_to_vmem [thread:$0]  %s656_s5, 1024, %s41_s16, [#allocation6], %s532_s11, %s532_s11, %s533_s12  }
  0x23   :  { %525 = dma.done.wait [#allocation3], 1024  }
  0x24   :  { %526 = vsyncadd [#allocation3], 4294966272 }
  0x25   :  { %527 = dma.done.wait [#allocation6], 1024  }
  0x26   :  { %528 = vsyncadd [#allocation6], 4294966272  ;;  %v535_v0 = vmov 0   ;;  %v536_v1 = vmov 2   ;;  %v537_v2 = vmov 0.0   ;;  %v56_v3 = vld [vmem:[%s651_s0] sm:$0xff]  ;;  %v63_v20 = vlaneseq }
  0x27   :  { %438 = vset.pattern.permute.xlu0 %v535_v0  ;;  %440 = vset.pattern.permute.xlu1 %v536_v1  ;;  %v443_v4 = vld [vmem:[#allocation2] sm:$0xff]   ;;  %v444_v5 = vld [vmem:[#allocation2 + $0x8] sm:$0xff]   ;;  %v538_v6 = vmov 1   ;;  %v539_v7 = vmov 3   ;;  %v445_v8 = vld [vmem:[#allocation2 + $0x10] sm:$0xff]   ;;  %vm540_vm0 = vmmov 0  }
  0x28   :  { %387 = vmatprep.subr.bf16.mxu0 %v537_v2  ;;  %407 = vmatprep.subr.bf16.mxu1 %v537_v2  ;;  %v446_v9 = vld [vmem:[#allocation2 + $0x18] sm:$0xff]   ;;  %v447_v10 = vld [vmem:[#allocation2 + $0x20] sm:$0xff]   ;;  %v448_v11 = vld [vmem:[#allocation2 + $0x28] sm:$0xff]   ;;  %v64_v21 = vshrl.u32 %v63_v20, 7  ;;  %s541_s9 = smov [#allocation7]  }
  0x29   :  { %60 = vperm.xlu0 %438, %v56_v3   ;;  %79 = vperm.xlu1 %440, %v56_v3   ;;  %v451_v12 = vld [vmem:[#allocation5] sm:$0xff]   ;;  %v452_v13 = vld [vmem:[#allocation5 + $0x8] sm:$0xff]   ;;  %v449_v14 = vld [vmem:[#allocation2 + $0x30] sm:$0xff]   ;;  %s340_s10 = sshll.u32 %s541_s9, 4  ;;  %s341_s10 = int_to_ptr.vmem [resolvable:$true] %s340_s10 }
  0x2a   :  { %388 = vmatpush3.bf16.msra.mxu0 %v443_v4  ;;  %403 = vmatprep.mubr.msk.bf16.mxu0 %vm540_vm0, %v537_v2  ;;  %v453_v15 = vld [vmem:[#allocation5 + $0x10] sm:$0xff]   ;;  %v450_v16 = vld [vmem:[#allocation2 + $0x38] sm:$0xff]   ;;  %v455_v18 = vld [vmem:[#allocation5 + $0x20] sm:$0xff]   ;;  %v65_v22 = vsub.s32 0, %v64_v21  ;;  %v74_v23 = vsub.s32 1, %v64_v21  ;;  %v84_v26 = vsub.s32 2, %v64_v21  ;;  %p508_p3 = scmp.lt.s32.totalorder %s341_s10, %s341_s10 }
  0x2b   :  { %389 = vmatprep.subr.bf16.mxu0 %v537_v2  ;;  %423 = vmatprep.mubr.msk.bf16.mxu1 %vm540_vm0, %v537_v2  ;;  %v454_v17 = vld [vmem:[#allocation5 + $0x18] sm:$0xff]   ;;  %v456_v19 = vld [vmem:[#allocation5 + $0x28] sm:$0xff]   ;;  %v57_v24 = vld [vmem:[%s652_s1] sm:$0xf]  ;;  %v94_v28 = vsub.s32 3, %v64_v21 }
  0x2c   :  { %408 = vmatpush3.bf16.msra.mxu1 %v451_v12  ;;  %v66_v29 = vrot.slane %v57_v24, %v65_v22  ;;  %v75_v30 = vrot.slane %v57_v24, %v74_v23  ;;  %v85_v31 = vrot.slane %v57_v24, %v84_v26  ;;  %v350_v41 = vld [vmem:[%s653_s2] ss:$0 sm:$0xff]  ;;  %v457_v46 = vld [vmem:[#allocation5 + $0x30] sm:$0xff]   ;;  %v458_v47 = vld [vmem:[#allocation5 + $0x38] sm:$0xff]  }
  0x2d   :  { %439 = vset.pattern.permute.xlu0 %v538_v6  ;;  %441 = vset.pattern.permute.xlu1 %v539_v7  ;;  %v95_v32 = vrot.slane %v57_v24, %v94_v28  ;;  %v351_v48 = vld [vmem:[%s655_s4] ss:$0 sm:$0xff]  ;;  %s503_s4 = scalar_lea.vmem %s341_s10, 64 }
  0x2e   :  { %69 = vperm.xlu0 %439, %v56_v3   ;;  %89 = vperm.xlu1 %441, %v56_v3   ;;  %v360_v56 = vld [vmem:[%s657_s6] ss:$0 sm:$0xff]  ;;  %p504_p2 = scmp.ne.s32.totalorder %s341_s10, %s503_s4  ;;  %p509_p4 = scmp.lt.s32.totalorder %s503_s4, %s503_s4 }
  0x2f   :  { %390 = vmatpush3.bf16.msra.mxu0 %v444_v5  ;;  %409 = vmatprep.subr.bf16.mxu1 %v537_v2 }
  0x30   :  { %391 = vmatprep.subr.bf16.mxu0 %v537_v2  ;;  %410 = vmatpush3.bf16.msra.mxu1 %v452_v13  ;;  %p510_p5 = por %p509_p4, %p508_p3 }
  0x31   :  { %411 = vmatprep.subr.bf16.mxu1 %v537_v2 }
  0x32   :  { %442 = vset.pattern.permute.xlu0 %v539_v7  ;;  %p511_p6 = pnand %p510_p5, %p504_p2 }
  0x33   :  { %392 = vmatpush3.bf16.msra.mxu0 %v445_v8 }
  0x34   :  { %393 = vmatprep.subr.bf16.mxu0 %v537_v2  ;;  %412 = vmatpush3.bf16.msra.mxu1 %v453_v15 }
  0x35   :  { %413 = vmatprep.subr.bf16.mxu1 %v537_v2 }
  0x37   :  { %394 = vmatpush3.bf16.msra.mxu0 %v446_v9 }
  0x38   :  { %395 = vmatprep.subr.bf16.mxu0 %v537_v2  ;;  %414 = vmatpush3.bf16.msra.mxu1 %v454_v17 }
  0x39   :  { %415 = vmatprep.subr.bf16.mxu1 %v537_v2 }
  0x3b   :  { %396 = vmatpush3.bf16.msra.mxu0 %v447_v10 }
  0x3c   :  { %397 = vmatprep.subr.bf16.mxu0 %v537_v2  ;;  %416 = vmatpush3.bf16.msra.mxu1 %v455_v18 }
  0x3d   :  { %417 = vmatprep.subr.bf16.mxu1 %v537_v2 }
  0x3f   :  { %398 = vmatpush3.bf16.msra.mxu0 %v448_v11 }
  0x40   :  { %399 = vmatprep.subr.bf16.mxu0 %v537_v2  ;;  %418 = vmatpush3.bf16.msra.mxu1 %v456_v19 }
  0x41   :  { %419 = vmatprep.subr.bf16.mxu1 %v537_v2 }
  0x43   :  { %400 = vmatpush3.bf16.msra.mxu0 %v449_v14 }
  0x44   :  { %401 = vmatprep.subr.bf16.mxu0 %v537_v2  ;;  %420 = vmatpush3.bf16.msra.mxu1 %v457_v46 }
  0x45   :  { %421 = vmatprep.subr.bf16.mxu1 %v537_v2 }
  0x47   :  { %402 = vmatpush3.bf16.msra.mxu0 %v450_v16 }
  0x48   :  { %422 = vmatpush3.bf16.msra.mxu1 %v458_v47 }
  0xa8   :  { %v61_v25 = vpop.permute.xlu0 %60  ;;  %v80_v27 = vpop.permute.xlu1 %79 }
  0xa9   :  { %v67_v35 = vmul.f32 %v66_v29, %v61_v25  ;;  %v86_v37 = vmul.f32 %v85_v31, %v80_v27 }
  0xad   :  { %v70_v33 = vpop.permute.xlu0 %69  ;;  %v90_v34 = vpop.permute.xlu1 %89 }
  0xae   :  { %v76_v36 = vmul.f32 %v75_v30, %v70_v33  ;;  %v96_v39 = vmul.f32 %v95_v32, %v90_v34 }
  0xb0   :  { %v77_v38 = vadd.f32 %v76_v36, %v67_v35 }
  0xb2   :  { %v87_v40 = vadd.f32 %v86_v37, %v77_v38 }
  0xb4   :  { %v97_v42 = vadd.f32 %v96_v39, %v87_v40 }
  0xb6   :  { %v105_v43 = vadd.f32 %v350_v41, %v97_v42 }
  0xb8   :  { %v106_v44 = vmax.f32 %v105_v43, 0.0 }
  0xba   :  { %v107_v45 = vpack.c.bf16 %v106_v44, %v106_v44 }
  0xbc   :  { %404 = vmatmul.mubr.bf16.vlgmr.msra.gmra.mrb[0].mxu0 %v107_v45 }
 0x18f   :  { %v213_v49 = vpop.f32.mrb[0].mxu0 }
 0x190   :  { %v214_v50 = vadd.f32 %v351_v48, %v213_v49  ;;  %v405_v51 = vpop.f32.mrb[1].mxu0 }
 0x191   :  { %v216_v52 = vpop.f32.mrb[2].mxu0 }
 0x192   :  { %v219_v53 = vmax.f32 %v214_v50, 0.0  ;;  %v406_v54 = vpop.f32.mrb[3].mxu0 }
 0x194   :  { %v220_v55 = vpack.c.bf16 %v219_v53, %v219_v53 }
 0x196   :  { %424 = vmatmul.mubr.bf16.vlgmr.msra.gmra.mrb[0].mxu1 %v220_v55 }
 0x269   :  { %v326_v57 = vpop.f32.mrb[0].mxu1 }
 0x26a   :  { %v327_v58 = vadd.f32 %v360_v56, %v326_v57  ;;  %v425_v59 = vpop.f32.mrb[1].mxu1 }
 0x26b   :  { %v329_v60 = vpop.f32.mrb[2].mxu1 }
 0x26c   :  { %v332_v61 = vpack.c.bf16 %v327_v58, %v327_v58  ;;  %v426_v62 = vpop.f32.mrb[3].mxu1 }
 0x26e   :  { %333 = vst [vmem:[#allocation7] sm:$0xf] %v332_v61 }
 0x26f   :  { %514 = shalt.err (!%p511_p6)
}
 0x270   :  { %s515_s6 = scalar_lea.hbm %s658_s7, 64 }
 0x271   :  { %p516_p7 = scmp.ne.s32.totalorder %s658_s7, %s515_s6  ;;  %p519_p8 = scmp.lt.u32.totalorder %s515_s6, %s658_s7 }
 0x273   :  { %p521_p9 = pnand %p519_p8, %p516_p7 }
 0x275   :  { %524 = shalt.err (!%p521_p9)
}
 0x276   :  { %343 = dma.vmem_to_hbm [thread:$0]  %s341_s10, 64, %s658_s7, [#allocation4]  }
 0x277   :  { %529 = dma.done.wait [#allocation4], 64  }
 0x278   :  { %530 = vsyncadd [#allocation4], 4294967232 }
 0x279   :  { %347 = vsyncpa [#allocation3], 1 }
 0x27a   :  { %348 = vsyncpa [#allocation6], 1 }
 0x27b   :  { %349 = vsyncpa [#allocation4], 1 }

</bundles_post_ra>
